<compile_context>
chip_gen: v7x
topology: tpu7x:2x2x1
jax: 0.10.0
libtpu: 0.0.40
codegen_flags: <defaults>
</compile_context>

<pallas_src>
import functools

import jax
import jax.numpy as jnp
from jax.experimental import pallas as pl
from jax.experimental.pallas import tpu as pltpu


def _policy_kernel(x_ref, p_ref, out_ref, *, s_size, h_size, a_size):
    # x_ref:   (S, TB)    transposed activation tile (batch in the lane dim)
    # p_ref:   (R, 128)   packed params:
    #            rows [0:H), cols [0:S)             -> w1^T          (H, S)
    #            rows [0:H), col  [S]               -> b1 (column)   (H, 1)
    #            rows [0:A), cols [S+1:S+1+H)       -> w2^T          (A, H)
    #            rows [0:A), col  [S+1+H]           -> b2 (column)   (A, 1)
    # out_ref: (A, TB)    transposed probabilities
    xt = x_ref[...]                                                # (S, TB)

    w1t = p_ref[0:h_size, 0:s_size]                                # (H, S)
    b1c = p_ref[0:h_size, s_size:s_size + 1]                       # (H, 1)
    w2t = p_ref[0:a_size, s_size + 1:s_size + 1 + h_size]          # (A, H)
    b2c = p_ref[0:a_size, s_size + 1 + h_size:s_size + 2 + h_size] # (A, 1)

    # fc1 + ReLU: (H,S)@(S,TB) on the MXU, lane-dense f32 result.
    ht = jnp.dot(w1t, xt, preferred_element_type=jnp.float32) + b1c
    ht = jnp.maximum(ht, 0.0)                                      # (H, TB)

    # fc3: (A,H)@(H,TB) on the MXU (slot is otherwise idle), lane-dense result.
    logits = jnp.dot(w2t, ht, preferred_element_type=jnp.float32) + b2c  # (A, TB)

    if a_size == 2:
        # 2-class softmax == sigmoid of the logit difference; rows sum to 1
        # exactly (up to 1 ulp) — no cross-lane max/sum, no approx reciprocal.
        d = logits[0:1, :] - logits[1:2, :]                        # (1, TB)
        p0 = 1.0 / (1.0 + jnp.exp(-d))
        out_ref[...] = jnp.concatenate([p0, 1.0 - p0], axis=0).astype(out_ref.dtype)
    else:
        # Generic fallback (exact division for proper normalization).
        m = jnp.max(logits, axis=0, keepdims=True)
        e = jnp.exp(logits - m)
        out_ref[...] = (e / jnp.sum(e, axis=0, keepdims=True)).astype(out_ref.dtype)


def pack_params(w1, b1, w2, b2):
    """Pack all parameters (pre-transposed) into a single (R, 128) f32 slab."""
    s_size, h_size = w1.shape
    a_size = w2.shape[1]
    rows = max(8, ((max(h_size, a_size) + 7) // 8) * 8)
    cols = 128
    assert h_size <= rows and a_size <= rows
    assert s_size + 2 + h_size <= cols
    slab = jnp.zeros((rows, cols), jnp.float32)
    slab = slab.at[0:h_size, 0:s_size].set(w1.T.astype(jnp.float32))
    slab = slab.at[0:h_size, s_size:s_size + 1].set(
        b1.reshape(h_size, 1).astype(jnp.float32))
    slab = slab.at[0:a_size, s_size + 1:s_size + 1 + h_size].set(
        w2.T.astype(jnp.float32))
    slab = slab.at[0:a_size, s_size + 1 + h_size:s_size + 2 + h_size].set(
        b2.reshape(a_size, 1).astype(jnp.float32))
    return slab


def policy_forward(x, w1, b1, w2, b2, *, max_block_b=2048):
    """y = softmax(relu(x @ w1 + b1) @ w2 + b2) for x of shape (B, s_size)."""
    B, s_size = x.shape
    h_size = w1.shape[1]
    a_size = w2.shape[1]

    slab = pack_params(w1, b1, w2, b2)

    # Lane tile: multiple of 128 (f32 lane width), as large as possible to
    # amortize per-grid-step overhead; VMEM cost is trivial (tb*4B per row).
    b128 = ((B + 127) // 128) * 128
    tb = min(max_block_b, b128)
    # v7x has 2 TensorCores: prefer >= 2 grid steps on the "parallel" axis when
    # we can keep the tile a multiple of 128.
    if (b128 // tb) < 2 and tb % 256 == 0:
        tb //= 2
    b_pad = ((B + tb - 1) // tb) * tb

    # Transposed, lane-dense activations: (S, B_pad). Only the tiny (S, B)
    # array is padded (at most tb-1 extra lanes of a 4-row array).
    xt = x.T
    if b_pad != B:
        xt = jnp.pad(xt, ((0, 0), (0, b_pad - B)))

    kernel = functools.partial(
        _policy_kernel, s_size=s_size, h_size=h_size, a_size=a_size)

    out_t = pl.pallas_call(
        kernel,
        out_shape=jax.ShapeDtypeStruct((a_size, b_pad), jnp.float32),
        grid=(b_pad // tb,),
        in_specs=[
            # batch tile of transposed activations: lane-dense, sublane dim = S
            pl.BlockSpec((s_size, tb), lambda i: (0, i)),
            # packed params: constant block index -> fetched once, VMEM-resident
            pl.BlockSpec(slab.shape, lambda i: (0, 0)),
        ],
        out_specs=pl.BlockSpec((a_size, tb), lambda i: (0, i)),
        compiler_params=pltpu.CompilerParams(
            dimension_semantics=("parallel",)),
    )(xt, slab)

    return out_t[:, :B].T


def init_params(key, s_size=4, h_size=16, a_size=2):
    # Deterministic init mimicking nn.Linear default: U(-1/sqrt(fan_in), +1/sqrt(fan_in)).
    k1, k2, k3, k4 = jax.random.split(key, 4)
    bound1 = 1.0 / jnp.sqrt(float(s_size))
    bound2 = 1.0 / jnp.sqrt(float(h_size))
    # Stored as (in, out) so the math is x @ W (== PyTorch x @ W.T).
    w1 = jax.random.uniform(k1, (s_size, h_size), jnp.float32, -bound1, bound1)
    b1 = jax.random.uniform(k2, (1, h_size), jnp.float32, -bound1, bound1)
    w2 = jax.random.uniform(k3, (h_size, a_size), jnp.float32, -bound2, bound2)
    b2 = jax.random.uniform(k4, (1, a_size), jnp.float32, -bound2, bound2)
    return w1, b1, w2, b2


def reference_forward(x, w1, b1, w2, b2):
    h = jnp.maximum(x @ w1 + b1, 0.0)
    logits = h @ w2 + b2
    return jax.nn.softmax(logits, axis=1)


if __name__ == "__main__":
    key = jax.random.PRNGKey(0)
    k_x_big, k_x_small, k_p = jax.random.split(key, 3)

    s_size, h_size, a_size = 4, 16, 2
    w1, b1, w2, b2 = init_params(k_p, s_size, h_size, a_size)

    # Batched path (2 grid steps of 128 lanes -> both v7x TCs usable).
    batch_big = 256
    x_big = jax.random.normal(k_x_big, (batch_big, s_size), jnp.float32)
    out_big = jax.block_until_ready(policy_forward(x_big, w1, b1, w2, b2))
    ref_big = reference_forward(x_big, w1, b1, w2, b2)
    assert out_big.shape == (batch_big, a_size)
    assert jnp.allclose(out_big, ref_big, atol=1e-3, rtol=1e-3)
    assert jnp.allclose(jnp.sum(out_big, axis=1), jnp.ones((batch_big,)), atol=1e-3)

    # Small-batch path (the module's typical act()/pre() usage), via padding.
    batch_small = 2
    x_small = jax.random.normal(k_x_small, (batch_small, s_size), jnp.float32)
    out_small = jax.block_until_ready(policy_forward(x_small, w1, b1, w2, b2))
    ref_small = reference_forward(x_small, w1, b1, w2, b2)
    assert out_small.shape == (batch_small, a_size)
    assert jnp.allclose(out_small, ref_small, atol=1e-3, rtol=1e-3)
    assert jnp.allclose(jnp.sum(out_small, axis=1), jnp.ones((batch_small,)), atol=1e-3)

    # TODO(synk): act()/pre() Categorical sampling / log_prob stay host-side (not part of forward).
    print("KERNEL_OK")
</pallas_src>

<mosaic_0001>
module attributes {stable_mosaic.version = 11 : i64} {
  func.func @_policy_kernel(%arg0: i32, %arg1: memref<4x128xf32, #tpu.memory_space<vmem>>, %arg2: memref<16x128xf32, #tpu.memory_space<vmem>>, %arg3: memref<2x128xf32, #tpu.memory_space<vmem>>) attributes {dimension_semantics = [#tpu.dimension_semantics<parallel>], iteration_bounds = array<i64: 2>, scalar_prefetch = 0 : i64, scratch_operands = 0 : i64, tpu.core_type = #tpu.core_type<tc>, window_params = [{transform_indices = @transform_0, window_bounds = array<i64: 4, 128>}, {pipeline_mode = #tpu.pipeline_mode<synchronous>, transform_indices = @transform_1, window_bounds = array<i64: 16, 128>}, {transform_indices = @transform_2, window_bounds = array<i64: 2, 128>}]} {
    %c0 = arith.constant 0 : index
    %c0_0 = arith.constant 0 : index
    %0 = vector.load %arg1[%c0, %c0_0] : memref<4x128xf32, #tpu.memory_space<vmem>>, vector<4x128xf32>
    %c0_1 = arith.constant 0 : index
    %c0_2 = arith.constant 0 : index
    %1 = vector.load %arg2[%c0_1, %c0_2] : memref<16x128xf32, #tpu.memory_space<vmem>>, vector<16x4xf32>
    %c0_3 = arith.constant 0 : index
    %c4 = arith.constant 4 : index
    %2 = vector.load %arg2[%c0_3, %c4] : memref<16x128xf32, #tpu.memory_space<vmem>>, vector<16x1xf32>
    %c0_4 = arith.constant 0 : index
    %c5 = arith.constant 5 : index
    %3 = vector.load %arg2[%c0_4, %c5] : memref<16x128xf32, #tpu.memory_space<vmem>>, vector<2x16xf32>
    %c0_5 = arith.constant 0 : index
    %c21 = arith.constant 21 : index
    %4 = vector.load %arg2[%c0_5, %c21] : memref<16x128xf32, #tpu.memory_space<vmem>>, vector<2x1xf32>
    %cst = arith.constant dense<0.000000e+00> : vector<16x128xf32>
    %5 = tpu.matmul %1, %0, %cst {dimension_numbers = #tpu.dot_dimension_numbers<[1], [0], [0], [1], [0, 0, 1, 1], [], []>} : vector<16x4xf32>, vector<4x128xf32>, vector<16x128xf32> -> vector<16x128xf32>
    %6 = vector.broadcast %2 : vector<16x1xf32> to vector<16x128xf32>
    %7 = arith.addf %5, %6 : vector<16x128xf32>
    %cst_6 = arith.constant 0.000000e+00 : f32
    %8 = vector.broadcast %cst_6 : f32 to vector<16x128xf32>
    %9 = arith.maximumf %7, %8 : vector<16x128xf32>
    %cst_7 = arith.constant dense<0.000000e+00> : vector<2x128xf32>
    %10 = tpu.matmul %3, %9, %cst_7 {dimension_numbers = #tpu.dot_dimension_numbers<[1], [0], [0], [1], [0, 0, 1, 1], [], []>} : vector<2x16xf32>, vector<16x128xf32>, vector<2x128xf32> -> vector<2x128xf32>
    %11 = vector.broadcast %4 : vector<2x1xf32> to vector<2x128xf32>
    %12 = arith.addf %10, %11 : vector<2x128xf32>
    %13 = vector.extract_strided_slice %12 {offsets = [0, 0], sizes = [1, 128], strides = [1, 1]} : vector<2x128xf32> to vector<1x128xf32>
    %14 = vector.extract_strided_slice %12 {offsets = [1, 0], sizes = [1, 128], strides = [1, 1]} : vector<2x128xf32> to vector<1x128xf32>
    %15 = arith.subf %13, %14 : vector<1x128xf32>
    %cst_8 = arith.constant 0.000000e+00 : f32
    %16 = vector.broadcast %cst_8 : f32 to vector<1x128xf32>
    %17 = arith.subf %16, %15 : vector<1x128xf32>
    %18 = math.exp %17 : vector<1x128xf32>
    %cst_9 = arith.constant 1.000000e+00 : f32
    %19 = vector.broadcast %cst_9 : f32 to vector<1x128xf32>
    %20 = arith.addf %19, %18 : vector<1x128xf32>
    %cst_10 = arith.constant 1.000000e+00 : f32
    %21 = vector.broadcast %cst_10 : f32 to vector<1x128xf32>
    %22 = arith.divf %21, %20 : vector<1x128xf32>
    %cst_11 = arith.constant 1.000000e+00 : f32
    %23 = vector.broadcast %cst_11 : f32 to vector<1x128xf32>
    %24 = arith.subf %23, %22 : vector<1x128xf32>
    %25 = tpu.concatenate %22, %24 in 0 : vector<1x128xf32>, vector<1x128xf32> -> vector<2x128xf32>
    %c0_12 = arith.constant 0 : index
    %c0_13 = arith.constant 0 : index
    %26 = vector.load %arg3[%c0_12, %c0_13] : memref<2x128xf32, #tpu.memory_space<vmem>>, vector<2x128xf32>
    tpu.vector_store %arg3[%c0_12, %c0_13], %25 {strides = array<i32>} : memref<2x128xf32, #tpu.memory_space<vmem>>, vector<2x128xf32>,
    return
  }
  func.func @transform_0(%arg0: i32) -> (i32, i32) {
    %c0_i32 = arith.constant 0 : i32
    %c0_i32_0 = arith.constant 0 : i32
    return %c0_i32, %arg0 : i32, i32
  }
  func.func @transform_1(%arg0: i32) -> (i32, i32) {
    %c0_i32 = arith.constant 0 : i32
    %c0_i32_0 = arith.constant 0 : i32
    %c0_i32_1 = arith.constant 0 : i32
    return %c0_i32, %c0_i32_0 : i32, i32
  }
  func.func @transform_2(%arg0: i32) -> (i32, i32) {
    %c0_i32 = arith.constant 0 : i32
    %c0_i32_0 = arith.constant 0 : i32
    return %c0_i32, %arg0 : i32, i32
  }
}

</mosaic_0001>

<bundles_post_ra>
// kernel: tpu_custom_call.1
= control target key start
LH: loop header
LB: loop body
LE: loop exit
PB: predicated region body
PF: predicated region fallthrough
CT: control target
= control target key end

     0   :  { %7 = vsyncpa [#allocation3], 0  ;;  %s929_s0 = inlined_call_operand.hbm [shape: f32[4,256], index: 0, kind: input, shape index: {}]   ;;  %s930_s1 = inlined_call_operand.hbm [shape: f32[16,128], index: 1, kind: input, shape index: {}]   ;;  %s931_s2 = inlined_call_operand.hbm [shape: f32[2,256], index: 2, kind: output, shape index: {}]  }
   0x1   :  { %9 = vsyncpa [#allocation3 + $0x1], 0 }
   0x2   :  { %10 = vsyncpa [#allocation6], 0 }
   0x3   :  { %11 = vsyncpa [#allocation4], 0 }
   0x4   :  { %13 = vsyncpa [#allocation4 + $0x1], 0  ;;  %s732_s9 = smov 0   ;;  %s734_s10 = smov 0  }
   0x5   :  { %s736_s11 = smov 0   ;;  %s738_s12 = smov 0  }
   0x6 LB: > { %s753_s13 = sadd.s32 4294967295, %s704_s12   ;;  %s465_s14 = sadd.s32 4294967294, %s704_s12   ;;  %s704_s12 = sphi %s738_s12, %s951_s12   ;;  %s700_s11 = sphi %s736_s11, %s950_s11   ;;  %s696_s10 = sphi %s734_s10, %s949_s10   ;;  %s692_s9 = sphi %s732_s9, %s948_s9  }
   0x7   : > { %p39_p0 = scmp.ne.s32.totalorder %s696_s10, %s692_s9  ;;  %p932_p1 = scmp.eq.s32.totalorder %s753_s13, 0 }
   0x8   : > { %p90_p3 = scmp.eq.s32.totalorder %s465_s14, 1  ;;  %p466_p5 = scmp.ge.s32.totalorder %s704_s12, 1 }
   0x9   : > { %p762_p4 = por %p932_p1, %p39_p0  ;;  %p97_p7 = scmp.lt.s32.totalorder %s704_s12, 3 }
   0xa   : > { %p767_p6 = por %p90_p3, %p39_p0  ;;  %s706_s18 = smov [#allocation5]  }
   0xb   : > { %s935_s15 = scalar_select %p762_p4, 1, 0 }
   0xc   : > { %s936_s16 = scalar_select %p767_p6, 1, 0 }
   0xd   : > { %p772_p8 = pnand %p466_p5, %p97_p7  ;;  %s109_s19 = sshll.u32 %s706_s18, 4  ;;  %s776_s19 = int_to_ptr.vmem [resolvable:$true] %s109_s19 }
   0xe   : > { %s788_s21 = sadd.s32 1, %s704_s12   ;;  %s26_s22 = sadd.s32 1, %s700_s11 }
   0xf   : > { %s937_s17 = scalar_select %p772_p8, 1, 0 }
  0x10   : > { %p512_p9 = pneg %p772_p8  ;;  %s23_s23 = ssub.s32 %s704_s12, %s788_s21 }
  0x11   : > { %s576_s26 = scalar_lea.hbm %s930_s1, 256 }
  0x12   : > { %p783_p11 = pnand %p512_p9, %p932_p1  ;;  %p577_p12 = scmp.ne.s32.totalorder %s930_s1, %s576_s26 }
  0x13   : > { %p583_p5 = scmp.lt.u32.totalorder %s576_s26, %s930_s1 }
  0x14   : > { %p578_p13 = pneg %p783_p11 }
  0x16   : > { %p579_p0 = pnand %p578_p13, %p577_p12 }
  0x18   : > { %p580_p3 = pneg %p579_p0 }
  0x1a   : > { %p585_p7 = pnand %p583_p5, %p580_p3 }
  0x1c   : > { %588 = shalt.err (!%p585_p7)
}
  0x1d   : > { %s589_s3 = scalar_lea.vmem %s776_s19, 256  ;;  %p597_p2 = scmp.lt.s32.totalorder %s776_s19, %s776_s19 }
  0x1e   : > { %p590_p9 = scmp.ne.s32.totalorder %s776_s19, %s589_s3  ;;  %p598_p6 = scmp.lt.s32.totalorder %s589_s3, %s589_s3 }
  0x20   : > { %p592_p10 = pnand %p590_p9, %p578_p13  ;;  %p599_p4 = por %p598_p6, %p597_p2 }
  0x22   : > { %p593_p1 = pneg %p592_p10 }
  0x24   : > { %p600_p8 = pnand %p599_p4, %p593_p1 }
  0x26   : > { %603 = shalt.err (!%p600_p8)
}
  0x27   : > { %s707_s4 = smov 128   ;;  %s708_s5 = smov 8  }
  0x28   : > { %515 = dma.hbm_to_vmem [thread:$0]  (!%p783_p11), %s930_s1, 256, %s776_s19, [#allocation6], %s707_s4, %s707_s4, %s708_s5  }
  0x29   : > { %p24_p2 = scmp.eq.s32.totalorder %s23_s23, 0  ;;  %p33_p1 = scmp.ne.s32.totalorder %s700_s11, %s696_s10 }
  0x2a   : > { %p34_p4 = scmp.eq.s32.totalorder %s704_s12, 0  ;;  %p525_p6 = scmp.lt.s32.totalorder %s704_s12, 2 }
  0x2b   : > { %s819_s8 = scalar_select %p24_p2, %s700_s11, %s26_s22  }
  0x2c   : > { %p35_p8 = por %p34_p4, %p33_p1  ;;  %p939_p10 = scmp.eq.s32.totalorder %s753_s13, 1 }
  0x2d   : > { %s123_s18 = sand.u32 1, %s700_s11   ;;  %s470_s24 = sshll.u32 %s704_s12, 6 }
  0x2e   : > { %p823_p12 = por %p939_p10, %p33_p1  ;;  %s469_s25 = sshll.u32 %s123_s18, 2 }
  0x2f   : > { %s832_s27 = scalar_lea.hbm %s929_s0, %s470_s24  ;;  %s127_s19 = scalar_lea.vmem [#allocation2], %s469_s25 }
  0x30   : > { %s134_s22 = sshll.u32 %s127_s19, 4  ;;  %p834_p11 = pnand %p525_p6, %p35_p8  ;;  %s838_s22 = int_to_ptr.vmem [resolvable:$true] %s134_s22 }
  0x31   : > { %s124_s28 = scalar_lea.sflag [#allocation3], %s123_s18  ;;  %s604_s29 = scalar_lea.hbm %s832_s27, 64 }
  0x32   : > { %p605_p13 = scmp.ne.s32.totalorder %s832_s27, %s604_s29  ;;  %p606_p0 = pneg %p834_p11 }
  0x33   : > { %s609_s4 = scalar_lea.hbm %s929_s0, 128  ;;  %p610_p7 = scmp.lt.u32.totalorder %s832_s27, %s929_s0 }
  0x34   : > { %p607_p3 = pnand %p606_p0, %p605_p13  ;;  %p611_p9 = scmp.lt.u32.totalorder %s609_s4, %s604_s29 }
  0x35   : > { %p613_p1 = scmp.lt.u32.totalorder %s604_s29, %s832_s27 }
  0x36   : > { %p608_p5 = pneg %p607_p3  ;;  %p612_p2 = por %p611_p9, %p610_p7 }
  0x38   : > { %p614_p4 = por %p613_p1, %p612_p2 }
  0x3a   : > { %p615_p6 = pnand %p614_p4, %p608_p5 }
  0x3c   : > { %618 = shalt.err (!%p615_p6)
}
  0x3d   : > { %s619_s7 = scalar_lea.vmem %s838_s22, 64  ;;  %s709_s18 = smov [#allocation2]  }
  0x3e   : > { %p620_p8 = scmp.ne.s32.totalorder %s838_s22, %s619_s7  ;;  %s624_s24 = sshll.u32 %s709_s18, 4  ;;  %s625_s24 = int_to_ptr.vmem [resolvable:$false] %s624_s24 }
  0x3f   : > { %s626_s25 = scalar_lea.vmem %s625_s24, 128  ;;  %p627_p3 = scmp.lt.s32.totalorder %s838_s22, %s625_s24 }
  0x40   : > { %p622_p10 = pnand %p620_p8, %p606_p0  ;;  %p628_p7 = scmp.lt.s32.totalorder %s626_s25, %s619_s7 }
  0x42   : > { %p623_p13 = pneg %p622_p10  ;;  %p629_p9 = por %p628_p7, %p627_p3 }
  0x44   : > { %p630_p2 = pnand %p629_p9, %p623_p13 }
  0x46   : > { %633 = shalt.err (!%p630_p2)
}
  0x47   : > { %519 = dma.hbm_to_vmem [thread:$0]  (!%p834_p11), %s832_s27, 64, %s838_s22, %s124_s28  }
  0x48   : > { %p942_p5 = scmp.ne.s32.totalorder %s937_s17, 0 }
  0x49   : > { %s868_s20 = sand.u32 (!%p942_p5), 1, %s696_s10   ;;  %p943_p0 = scmp.ne.s32.totalorder (!%p942_p5), %s935_s15, 0 }
  0x4a   : > { %143 = sbr.rel (%p942_p5) target bundleno = 575 (0x23f), region = 28  ;;  %s472_s26 = sshll.u32 (!%p942_p5), %s868_s20, 2 }
  0x4b   : > { %s146_s19 = scalar_lea.sflag (!%p942_p5), [#allocation3], %s868_s20  ;;  %s149_s29 = scalar_lea.vmem (!%p942_p5), [#allocation2], %s472_s26 }
  0x51   : > { %679 = dma.done.wait (%p943_p0), %s146_s19, 64  }
  0x52   : > { %681 = vsyncadd (%p943_p0), %s146_s19, 4294967232  ;;  %p944_p1 = scmp.eq.s32.totalorder %s753_s13, 0 }
  0x54   : > { %683 = dma.done.wait (%p944_p1), [#allocation6], 256   ;;  %p945_p11 = pmov %p944_p1 }
  0x55   : > { %v710_v0 = vmov 4   ;;  %vm193_vm0 = vcmask 1043456   ;;  %vm188_vm1 = vcmask 31744   ;;  %v174_v1 = vld [vmem:[%s149_s29] sm:$0xf]  ;;  %v175_v2 = vld [vmem:[#allocation5] sm:$0xff] }
  0x56   : > { %685 = vsyncadd (%p945_p11), [#allocation6], 4294967040  ;;  %569 = vset.pattern.permute.xlu0 %v710_v0  ;;  %v176_v3 = vld [vmem:[#allocation5 + $0x8] sm:$0xff]  ;;  %489 = vmatprep.subr.msk.mxu0 %vm193_vm0, %v174_v1  ;;  %v177_v4 = vld [vmem:[#allocation5] sm:$0x3]  ;;  %s711_s15 = smov 123  }
  0x57   : > { %491 = vmatprep.mubr.msk.f32.mxu0 %vm188_vm1, %v175_v2  ;;  %490 = vmatpush3.msk.msra.mxu0 %vm193_vm0, %v174_v1  ;;  %v712_v5 = vmov 0.0|0.0   ;;  %vm713_vm2 = vmmov 0   ;;  %v714_v6 = vmov 0.0   ;;  %v715_v7 = vmov 21   ;;  %s474_s17 = sshll.u32 %s868_s20, 1  ;;  %s480_s27 = sshll.u32 %s753_s13, 5 }
  0x58   : > { %180 = vperm.xlu0 %569, %v175_v2   ;;  %492 = vmatmul.mubr.msk.f32.vlgmr.msra.gmra.mrb[0].mxu0 %vm188_vm1, %v176_v3  ;;  %vm281_vm3 = vcmask 130048   ;;  %s173_s22 = scalar_lea.vmem [#allocation7], %s474_s17  ;;  %vm368_vm4 = vcmask 1040384   ;;  %s885_s3 = scalar_lea.hbm %s931_s2, %s480_s27 }
  0x59   : > { %279 = vrot.lane.b32.xlu1 %v177_v4, %s711_s15  ;;  %501 = vmatprep.subr.bf16.mxu1 %v712_v5  ;;  %s385_s23 = sshll.u32 %s173_s22, 4  ;;  %s372_s4 = scalar_lea.sflag [#allocation4], %s868_s20  ;;  %s887_s23 = int_to_ptr.vmem [resolvable:$true] %s385_s23 }
  0x5a   : > { %498 = vmatprep.mubr.msk.f32.mxu1 %vm713_vm2, %v714_v6  ;;  %570 = vset.pattern.permute.xlu1 %v715_v7  ;;  %s634_s5 = scalar_lea.vmem %s887_s23, 32  ;;  %s716_s13 = smov [#allocation7]  }
  0x5b   : > { %p635_p4 = scmp.ne.s32.totalorder %s887_s23, %s634_s5  ;;  %s638_s6 = sshll.u32 %s716_s13, 4  ;;  %s639_s6 = int_to_ptr.vmem [resolvable:$false] %s638_s6 }
  0x5c   : > { %185 = vperm.xlu0 %569, %v176_v3   ;;  %s640_s7 = scalar_lea.vmem %s639_s6, 64  ;;  %p641_p10 = scmp.lt.s32.totalorder %s887_s23, %s639_s6 }
  0x5d   : > { %276 = vperm.xlu1 %570, %v177_v4   ;;  %p636_p6 = pnand %p635_p4, %p823_p12  ;;  %p642_p13 = scmp.lt.s32.totalorder %s640_s7, %s634_s5 }
  0x5f   : > { %p637_p8 = pneg %p636_p6  ;;  %p643_p3 = por %p642_p13, %p641_p10 }
  0x60   : > { %571 = vset.pattern.permute.xlu0 %v715_v7 }
  0x61   : > { %p644_p7 = pnand %p643_p3, %p637_p8 }
  0xcb   : > { %v280_v17 = vpop.permute.xlu1 %279 }
  0xd7   : > { %v181_v8 = vpop.permute.xlu0 %180 }
  0xdb   : > { %v186_v9 = vpop.permute.xlu0 %185 }
  0xdc   : > { %v277_v18 = vpop.permute.xlu1 %276 }
 0x12b   : > { %v493_v10 = vpop.f32.mrb[0].mxu0 }
 0x12c   : > { %v269_v11 = vadd.f32 %v493_v10, %v186_v9  ;;  %v263_v12 = vpop.f32.mrb[1].mxu0 }
 0x12d   : > { %v264_v13 = vadd.f32 %v263_v12, %v181_v8 }
 0x12e   : > { %v273_v14 = vmax.f32 %v269_v11, 0.0 }
 0x12f   : > { %v272_v15 = vmax.f32 %v264_v13, 0.0 }
 0x131   : > { %v502_v16 = vpack.c.bf16 %v273_v14, %v272_v15 }
 0x133   : > { %503 = vmatpush3.bf16.msra.mxu1 %v502_v16 }
 0x136   : > { %499 = vmatmul.mubr.msk.f32.vlgmr.msra.gmra.mrb[0].mxu1 %vm281_vm3, %v280_v17 }
 0x209   : > { %v350_v19 = vpop.f32.mrb[0].mxu1 }
 0x20a   : > { %v351_v20 = vadd.f32 %v350_v19, %v277_v18  ;;  %v500_v21 = vpop.f32.mrb[1].mxu1 }
 0x20c   : > { %v355_v22 = vrot.slane %v351_v20, 1 }
 0x20e   : > { %v357_v23 = vsub.f32 %v351_v20, %v355_v22 }
 0x210   : > { %v358_v24 = vsub.f32 0.0, %v357_v23 }
 0x212   : > { %v359_v25 = vmul.f32 1.442695, %v358_v24 }
 0x214   : > { %572 = vpow2.f32 %v359_v25 }
 0x21e   : > { %v573_v26 = vpop.eup %572 }
 0x21f   : > { %v361_v27 = vadd.f32 1.0, %v573_v26 }
 0x221   : > { %574 = vrcp.f32 %v361_v27 }
 0x22b   : > { %v575_v28 = vpop.eup %574 }
 0x22c   : > { %v364_v29 = vsub.f32 1.0, %v575_v28 }
 0x22e   : > { %v366_v30 = vrot.slane %v364_v29, 7 }
 0x230   : > { %v369_v31 = vsel %vm368_vm4, %v575_v28, %v366_v30 }
 0x231   : > { %370 = vst [vmem:[%s173_s22] sm:$0x3] %v369_v31 }
 0x232   : > { %647 = shalt.err (!%p644_p7)
}
 0x233   : > { %s648_s18 = scalar_lea.hbm %s885_s3, 32  ;;  %s652_s20 = scalar_lea.hbm %s931_s2, 64 }
 0x234   : > { %p649_p9 = scmp.ne.s32.totalorder %s885_s3, %s648_s18  ;;  %p653_p0 = scmp.lt.u32.totalorder %s885_s3, %s931_s2 }
 0x235   : > { %p654_p1 = scmp.lt.u32.totalorder %s652_s20, %s648_s18  ;;  %p656_p4 = scmp.lt.u32.totalorder %s648_s18, %s885_s3 }
 0x236   : > { %p650_p2 = pnand %p649_p9, %p823_p12 }
 0x237   : > { %p655_p11 = por %p654_p1, %p653_p0 }
 0x238   : > { %p651_p5 = pneg %p650_p2 }
 0x239   : > { %p657_p6 = por %p656_p4, %p655_p11 }
 0x23b   : > { %p658_p8 = pnand %p657_p6, %p651_p5 }
 0x23d   : > { %661 = shalt.err (!%p658_p8)
}
 0x23e   : > { %510 = dma.vmem_to_hbm [thread:$0]  (%p823_p12), %s887_s23, 32, %s885_s3, %s372_s4  }
 0x23f PF: > { %s397_s29 = sand.u32 1, %s692_s9   ;;  %p946_p10 = scmp.ne.s32.totalorder %s936_s16, 0 }
 0x240   : > { %p947_p13 = scmp.ge.s32.totalorder %s704_s12, 2  ;;  %s398_s15 = scalar_lea.sflag [#allocation4], %s397_s29 }
 0x242   : > { %p521_p3 = pnand %p947_p13, %p946_p10 }
 0x244   : > { %687 = dma.done.wait (!%p521_p3), %s398_s15, 32  }
 0x245   : > { %689 = vsyncadd (!%p521_p3), %s398_s15, 4294967264  ;;  %p16_p7 = scmp.ge.s32.totalorder %s788_s21, 4   ;;  %s948_s9 = smov %s696_s10 }
 0x246   : > { %s949_s10 = smov %s700_s11  ;;  %s950_s11 = smov %s819_s8 }
 0x247   : > { %s951_s12 = smov %s788_s21  ;;  %18 = sbr.rel (!%p16_p7) target bundleno = 6 (0x6), region = 77 }
 0x24e   :  { %403 = vsyncpa [#allocation3], 1 }
 0x24f   :  { %405 = vsyncpa [#allocation3 + $0x1], 1 }
 0x250   :  { %406 = vsyncpa [#allocation6], 1 }
 0x251   :  { %407 = vsyncpa [#allocation4], 1 }
 0x252   :  { %409 = vsyncpa [#allocation4 + $0x1], 1 }

</bundles_post_ra>
